<compile_context>
chip_gen: v7x
topology: tpu7x:2x2x1
jax: 0.10.0
libtpu: 0.0.40
codegen_flags: <defaults>
</compile_context>

<pallas_src>
import math
import functools

import jax
import jax.numpy as jnp
from jax import lax
from jax.experimental import pallas as pl
from jax.experimental.pallas import tpu as pltpu


def _round_up(x, m):
    return (x + m - 1) // m * m


def _pick_batch_tile(B, b_tile):
    """Lane-axis batch tile: full extent for small B, otherwise a multiple of
    128 chosen so there are >= 2 grid tiles (v7x megacore)."""
    B8 = _round_up(B, 8)
    if B8 < 256:
        return B8                                   # single full-extent tile
    bt = min(_round_up(b_tile, 128), _round_up(B8, 128))
    while bt > 128 and pl.cdiv(B8, bt) < 2:
        bt = max(128, _round_up(bt // 2, 128))
    return bt


# -----------------------------------------------------------------------------
# Pallas kernel: fused embedding gather + MLP (+ final output Linear),
# computed entirely in transposed (features-on-sublane, batch-on-lane) layout.
# -----------------------------------------------------------------------------
def _fused_mlp_kernel(*refs, n_hidden, user_size, item_size, param_dtype):
    # refs = (user_idx, item_idx, U^T, I^T,
    #         W0u^T, W0i^T, b0, [W_i^T, b_i for i in 1..n_hidden-1],
    #         w_out_row, b_out, out_ref)
    user_ref, item_ref, u_tab_ref, i_tab_ref = refs[:4]
    out_ref = refs[-1]
    p = refs[4:-1]

    bt = user_ref.shape[1]

    uidx = user_ref[...]                                    # (1, bt) int32
    iidx = item_ref[...]                                    # (1, bt) int32

    # Embedding gather as (E, vocab) @ one_hot(vocab, bt) on the MXU against
    # VMEM-resident transposed tables.  Batch stays on the lane axis.
    u_oh = (lax.broadcasted_iota(jnp.int32, (user_size, bt), 0) == uidx
            ).astype(param_dtype)                           # (vocab_u, bt)
    i_oh = (lax.broadcasted_iota(jnp.int32, (item_size, bt), 0) == iidx
            ).astype(param_dtype)                           # (vocab_i, bt)
    # Cast back to param_dtype is exact: one-hot selection reproduces the
    # (already param_dtype) table values bit-for-bit.
    user_vec = jnp.dot(u_tab_ref[...], u_oh,
                       preferred_element_type=jnp.float32).astype(param_dtype)
    item_vec = jnp.dot(i_tab_ref[...], i_oh,
                       preferred_element_type=jnp.float32).astype(param_dtype)

    # Layer 0: W0^T @ concat(u, i) == W0u^T @ u + W0i^T @ i   -> (out0, bt)
    w0u_t, w0i_t, b0 = p[0][...], p[1][...], p[2][...]
    h = (jnp.dot(w0u_t, user_vec, preferred_element_type=jnp.float32)
         + jnp.dot(w0i_t, item_vec, preferred_element_type=jnp.float32)
         + b0)                                              # f32 (out0, bt)
    h = jnp.maximum(h, 0.0)                                 # ReLU (f32, VPU)

    # Remaining hidden layers (static unroll); weights are (out, in).
    for li in range(1, n_hidden):
        w_t = p[3 + 2 * (li - 1)][...]                      # (out, in) bf16
        b = p[4 + 2 * (li - 1)][...]                        # (out, 1)  f32
        h = jnp.dot(w_t, h.astype(param_dtype),
                    preferred_element_type=jnp.float32) + b
        h = jnp.maximum(h, 0.0)

    # Output layer: (1, H_last) @ (H_last, bt) -> lane-dense (1, bt) block.
    w_row = p[-2][...]                                      # (1, H_last)
    b_out = p[-1][...]                                      # (1, 1) f32
    out_ref[...] = jnp.dot(w_row, h.astype(param_dtype),
                           preferred_element_type=jnp.float32) + b_out


def fused_mlp(user, item, U, I, hidden_ws, hidden_bs, w_out, b_out, *,
              b_tile=512, param_dtype=jnp.bfloat16):
    """user/item: (B,) int32.  Returns logits of shape (B,) float32."""
    assert len(hidden_ws) == len(hidden_bs) and len(hidden_ws) >= 1
    n_hidden = len(hidden_ws)
    user_size, E = U.shape
    item_size, _ = I.shape
    assert hidden_ws[0].shape[0] == 2 * E, "layers[0] must equal 2*embed_size"
    B = user.shape[0]

    bt = _pick_batch_tile(B, b_tile)
    B_pad = _round_up(B, bt)
    num_tiles = B_pad // bt

    # Lane-dense index rows: one contiguous DMA per tile.
    user_p = jnp.pad(user.astype(jnp.int32), (0, B_pad - B)).reshape(1, B_pad)
    item_p = jnp.pad(item.astype(jnp.int32), (0, B_pad - B)).reshape(1, B_pad)

    cast = lambda a: a.astype(param_dtype)
    f32 = lambda a: a.astype(jnp.float32)

    # Transposed parameters: tables (E, vocab), weights (out, in), biases (out, 1).
    w0_t = hidden_ws[0].T                                    # (out0, 2E)
    args = [user_p, item_p, cast(U.T), cast(I.T),
            cast(w0_t[:, :E]), cast(w0_t[:, E:]),
            f32(hidden_bs[0].reshape(-1, 1))]
    for w, b in zip(hidden_ws[1:], hidden_bs[1:]):
        args += [cast(w.T), f32(b.reshape(-1, 1))]
    args += [cast(w_out.reshape(1, -1)), f32(b_out.reshape(1, 1))]

    const_args = args[2:]
    const_bytes = sum(int(a.size) * a.dtype.itemsize for a in const_args)
    # Per-tile working set (generous f32 upper bound): idx + out rows, one-hot,
    # gathered embeddings, all activation rows.
    act_rows = (user_size + item_size + 2 * E + 1
                + sum(int(w.shape[1]) for w in hidden_ws))
    tile_bytes = bt * (3 * 4 + act_rows * 4)

    # Cost hint for XLA's scheduler.
    gather_flops = 2 * E * (user_size + item_size)
    hidden_flops = sum(2 * int(w.shape[0]) * int(w.shape[1]) for w in hidden_ws)
    out_flops = 2 * int(hidden_ws[-1].shape[1])
    cost = pl.CostEstimate(
        flops=int(B_pad) * (gather_flops + hidden_flops + out_flops),
        transcendentals=0,
        bytes_accessed=int(const_bytes + user_p.nbytes + item_p.nbytes
                           + 4 * B_pad))

    kernel = functools.partial(_fused_mlp_kernel, n_hidden=n_hidden,
                               user_size=user_size, item_size=item_size,
                               param_dtype=param_dtype)

    idx_spec = pl.BlockSpec((1, bt), lambda i: (0, i))
    out_specs = pl.BlockSpec((1, bt), lambda i: (0, i))

    def build(single_buffer_consts):
        if single_buffer_consts:
            # Constants never re-DMA (constant index_map) -> single buffer
            # halves their resident VMEM footprint (matters on v7x's 64 MiB).
            def const_spec(a):
                return pl.BlockSpec(a.shape, lambda i: (0,) * a.ndim,
                                    pipeline_mode=pl.Buffered(1))
        else:
            def const_spec(a):
                return pl.BlockSpec(a.shape, lambda i: (0,) * a.ndim)

        in_specs = [idx_spec, idx_spec] + [const_spec(a) for a in const_args]

        resident = const_bytes * (1 if single_buffer_consts else 2)
        vmem_limit = int(min(64 << 20,
                             max(16 << 20,
                                 resident + 4 * tile_bytes + (2 << 20))))

        return pl.pallas_call(
            kernel,
            out_shape=jax.ShapeDtypeStruct((1, B_pad), jnp.float32),
            grid_spec=pltpu.PrefetchScalarGridSpec(
                num_scalar_prefetch=0,
                grid=(num_tiles,),
                in_specs=in_specs,
                out_specs=out_specs,
            ),
            compiler_params=pltpu.CompilerParams(
                dimension_semantics=("parallel",),
                vmem_limit_bytes=vmem_limit),
            cost_estimate=cost,
        )

    try:
        out = build(single_buffer_consts=True)(*args)
    except Exception:
        # pipeline_mode=pl.Buffered(1) not accepted by this jax version /
        # backend path; fall back to default double-buffering (constants are
        # still VMEM-resident and never re-DMA'd).
        out = build(single_buffer_consts=False)(*args)

    return out.reshape(-1)[:B]


def mlp_forward(user, item, U, I, hidden_ws, hidden_bs, w_out, b_out,
                param_dtype=jnp.bfloat16):
    # Whole forward (embedding gather + concat + MLP + output) is one kernel.
    # Dropout p=0 in the reference module -> identity, nothing to emit.
    return fused_mlp(user, item, U, I, hidden_ws, hidden_bs, w_out, b_out,
                     param_dtype=param_dtype)


# -----------------------------------------------------------------------------
# Parameter construction (mirrors _init_weight of the PyTorch module).
# -----------------------------------------------------------------------------
def init_params(key, user_size, item_size, embed_size, layers):
    keys = jax.random.split(key, 3 + 2 * len(layers))

    # Embeddings: normal(std=0.01)
    U = 0.01 * jax.random.normal(keys[0], (user_size, embed_size), jnp.float32)
    I = 0.01 * jax.random.normal(keys[1], (item_size, embed_size), jnp.float32)

    # Hidden Linear layers: xavier_uniform weights (stored as (in, out)), zero bias.
    hidden_ws, hidden_bs = [], []
    for li in range(1, len(layers)):
        fan_in, fan_out = layers[li - 1], layers[li]
        limit = math.sqrt(6.0 / (fan_in + fan_out))
        w = jax.random.uniform(keys[1 + li], (fan_in, fan_out), jnp.float32,
                               minval=-limit, maxval=limit)
        hidden_ws.append(w)
        hidden_bs.append(jnp.zeros((fan_out,), jnp.float32))

    # Output Linear: kaiming_uniform(a=1) ~ U(-sqrt(3/fan_in), sqrt(3/fan_in)), zero bias.
    fan_in = layers[-1]
    limit = math.sqrt(3.0 / fan_in)
    w_out = jax.random.uniform(keys[-1], (fan_in, 1), jnp.float32,
                               minval=-limit, maxval=limit)
    b_out = jnp.zeros((1,), jnp.float32)

    return U, I, hidden_ws, hidden_bs, w_out, b_out


# -----------------------------------------------------------------------------
if __name__ == "__main__":
    # Small, forward-consistent shapes.
    user_size, item_size = 50, 100
    embed_size = 16
    layers = (2 * embed_size, 32, 16)   # layers[0] must equal 2*embed_size
    batch = 8

    key = jax.random.PRNGKey(0)
    pkey, ukey, ikey = jax.random.split(key, 3)

    U, I, hidden_ws, hidden_bs, w_out, b_out = init_params(
        pkey, user_size, item_size, embed_size, layers)

    user = jax.random.randint(ukey, (batch,), 0, user_size, dtype=jnp.int32)
    item = jax.random.randint(ikey, (batch,), 0, item_size, dtype=jnp.int32)

    logits = mlp_forward(user, item, U, I, hidden_ws, hidden_bs, w_out, b_out)
    logits = jax.block_until_ready(logits)
    assert logits.shape == (batch,)

    # Pure-JAX reference with the same parameter/activation precision as the
    # kernel (bf16 params, f32 MXU accumulation, f32 bias/ReLU).
    def reference(dtype):
        uv = jnp.concatenate(
            [jnp.take(U.astype(dtype), user, axis=0),
             jnp.take(I.astype(dtype), item, axis=0)], axis=-1)
        h = uv
        for w, b in zip(hidden_ws, hidden_bs):
            h = jnp.maximum(
                jnp.dot(h.astype(dtype), w.astype(dtype),
                        preferred_element_type=jnp.float32) + b, 0.0)
        out = jnp.dot(h.astype(dtype), w_out.astype(dtype),
                      preferred_element_type=jnp.float32) + b_out
        return out.reshape(-1)

    ref_bf16 = reference(jnp.bfloat16)   # same math as the kernel
    ref_f32 = reference(jnp.float32)     # original PyTorch-module precision

    assert jnp.allclose(logits, ref_bf16, atol=1e-4, rtol=1e-3), (logits, ref_bf16)
    assert jnp.allclose(logits, ref_f32, atol=1e-2, rtol=1e-1), (logits, ref_f32)

    print("KERNEL_OK")
</pallas_src>

<mosaic_0001>
module attributes {stable_mosaic.version = 11 : i64} {
  func.func @_fused_mlp_kernel(%arg0: i32, %arg1: memref<1x8xi32, #tpu.memory_space<vmem>>, %arg2: memref<1x8xi32, #tpu.memory_space<vmem>>, %arg3: memref<16x50xbf16, #tpu.memory_space<vmem>>, %arg4: memref<16x100xbf16, #tpu.memory_space<vmem>>, %arg5: memref<32x16xbf16, #tpu.memory_space<vmem>>, %arg6: memref<32x16xbf16, #tpu.memory_space<vmem>>, %arg7: memref<32x1xf32, #tpu.memory_space<vmem>>, %arg8: memref<16x32xbf16, #tpu.memory_space<vmem>>, %arg9: memref<16x1xf32, #tpu.memory_space<vmem>>, %arg10: memref<1x16xbf16, #tpu.memory_space<vmem>>, %arg11: memref<1x1xf32, #tpu.memory_space<vmem>>, %arg12: memref<1x8xf32, #tpu.memory_space<vmem>>) attributes {dimension_semantics = [#tpu.dimension_semantics<parallel>], iteration_bounds = array<i64: 1>, scalar_prefetch = 0 : i64, scratch_operands = 0 : i64, tpu.core_type = #tpu.core_type<tc>, window_params = [{transform_indices = @transform_0, window_bounds = array<i64: 1, 8>}, {transform_indices = @transform_1, window_bounds = array<i64: 1, 8>}, {pipeline_mode = #tpu.pipeline_mode<synchronous>, transform_indices = @transform_2, window_bounds = array<i64: 16, 50>}, {pipeline_mode = #tpu.pipeline_mode<synchronous>, transform_indices = @transform_3, window_bounds = array<i64: 16, 100>}, {pipeline_mode = #tpu.pipeline_mode<synchronous>, transform_indices = @transform_4, window_bounds = array<i64: 32, 16>}, {pipeline_mode = #tpu.pipeline_mode<synchronous>, transform_indices = @transform_5, window_bounds = array<i64: 32, 16>}, {pipeline_mode = #tpu.pipeline_mode<synchronous>, transform_indices = @transform_6, window_bounds = array<i64: 32, 1>}, {pipeline_mode = #tpu.pipeline_mode<synchronous>, transform_indices = @transform_7, window_bounds = array<i64: 16, 32>}, {pipeline_mode = #tpu.pipeline_mode<synchronous>, transform_indices = @transform_8, window_bounds = array<i64: 16, 1>}, {pipeline_mode = #tpu.pipeline_mode<synchronous>, transform_indices = @transform_9, window_bounds = array<i64: 1, 16>}, {pipeline_mode = #tpu.pipeline_mode<synchronous>, transform_indices = @transform_10, window_bounds = array<i64: 1, 1>}, {transform_indices = @transform_11, window_bounds = array<i64: 1, 8>}]} {
    %c0 = arith.constant 0 : index
    %c0_0 = arith.constant 0 : index
    %0 = vector.load %arg1[%c0, %c0_0] : memref<1x8xi32, #tpu.memory_space<vmem>>, vector<1x8xi32>
    %c0_1 = arith.constant 0 : index
    %c0_2 = arith.constant 0 : index
    %1 = vector.load %arg2[%c0_1, %c0_2] : memref<1x8xi32, #tpu.memory_space<vmem>>, vector<1x8xi32>
    %2 = tpu.iota {dimensions = array<i32: 0>} : vector<50x8xi32>
    %3 = vector.broadcast %0 : vector<1x8xi32> to vector<50x8xi32>
    %4 = arith.cmpi eq, %2, %3 : vector<50x8xi32>
    %5 = arith.extui %4 : vector<50x8xi1> to vector<50x8xi32>
    %6 = arith.sitofp %5 : vector<50x8xi32> to vector<50x8xf32>
    %7 = arith.truncf %6 : vector<50x8xf32> to vector<50x8xbf16>
    %8 = tpu.iota {dimensions = array<i32: 0>} : vector<100x8xi32>
    %9 = vector.broadcast %1 : vector<1x8xi32> to vector<100x8xi32>
    %10 = arith.cmpi eq, %8, %9 : vector<100x8xi32>
    %11 = arith.extui %10 : vector<100x8xi1> to vector<100x8xi32>
    %12 = arith.sitofp %11 : vector<100x8xi32> to vector<100x8xf32>
    %13 = arith.truncf %12 : vector<100x8xf32> to vector<100x8xbf16>
    %c0_3 = arith.constant 0 : index
    %c0_4 = arith.constant 0 : index
    %14 = vector.load %arg3[%c0_3, %c0_4] : memref<16x50xbf16, #tpu.memory_space<vmem>>, vector<16x50xbf16>
    %cst = arith.constant dense<0.000000e+00> : vector<16x8xf32>
    %15 = tpu.matmul %14, %7, %cst {dimension_numbers = #tpu.dot_dimension_numbers<[1], [0], [0], [1], [0, 0, 1, 1], [], []>} : vector<16x50xbf16>, vector<50x8xbf16>, vector<16x8xf32> -> vector<16x8xf32>
    %16 = arith.truncf %15 : vector<16x8xf32> to vector<16x8xbf16>
    %c0_5 = arith.constant 0 : index
    %c0_6 = arith.constant 0 : index
    %17 = vector.load %arg4[%c0_5, %c0_6] : memref<16x100xbf16, #tpu.memory_space<vmem>>, vector<16x100xbf16>
    %cst_7 = arith.constant dense<0.000000e+00> : vector<16x8xf32>
    %18 = tpu.matmul %17, %13, %cst_7 {dimension_numbers = #tpu.dot_dimension_numbers<[1], [0], [0], [1], [0, 0, 1, 1], [], []>} : vector<16x100xbf16>, vector<100x8xbf16>, vector<16x8xf32> -> vector<16x8xf32>
    %19 = arith.truncf %18 : vector<16x8xf32> to vector<16x8xbf16>
    %c0_8 = arith.constant 0 : index
    %c0_9 = arith.constant 0 : index
    %20 = vector.load %arg5[%c0_8, %c0_9] : memref<32x16xbf16, #tpu.memory_space<vmem>>, vector<32x16xbf16>
    %c0_10 = arith.constant 0 : index
    %c0_11 = arith.constant 0 : index
    %21 = vector.load %arg6[%c0_10, %c0_11] : memref<32x16xbf16, #tpu.memory_space<vmem>>, vector<32x16xbf16>
    %c0_12 = arith.constant 0 : index
    %c0_13 = arith.constant 0 : index
    %22 = vector.load %arg7[%c0_12, %c0_13] : memref<32x1xf32, #tpu.memory_space<vmem>>, vector<32x1xf32>
    %cst_14 = arith.constant dense<0.000000e+00> : vector<32x8xf32>
    %23 = tpu.matmul %20, %16, %cst_14 {dimension_numbers = #tpu.dot_dimension_numbers<[1], [0], [0], [1], [0, 0, 1, 1], [], []>} : vector<32x16xbf16>, vector<16x8xbf16>, vector<32x8xf32> -> vector<32x8xf32>
    %cst_15 = arith.constant dense<0.000000e+00> : vector<32x8xf32>
    %24 = tpu.matmul %21, %19, %cst_15 {dimension_numbers = #tpu.dot_dimension_numbers<[1], [0], [0], [1], [0, 0, 1, 1], [], []>} : vector<32x16xbf16>, vector<16x8xbf16>, vector<32x8xf32> -> vector<32x8xf32>
    %25 = arith.addf %23, %24 : vector<32x8xf32>
    %26 = vector.broadcast %22 : vector<32x1xf32> to vector<32x8xf32>
    %27 = arith.addf %25, %26 : vector<32x8xf32>
    %cst_16 = arith.constant 0.000000e+00 : f32
    %28 = vector.broadcast %cst_16 : f32 to vector<32x8xf32>
    %29 = arith.maximumf %27, %28 : vector<32x8xf32>
    %c0_17 = arith.constant 0 : index
    %c0_18 = arith.constant 0 : index
    %30 = vector.load %arg8[%c0_17, %c0_18] : memref<16x32xbf16, #tpu.memory_space<vmem>>, vector<16x32xbf16>
    %c0_19 = arith.constant 0 : index
    %c0_20 = arith.constant 0 : index
    %31 = vector.load %arg9[%c0_19, %c0_20] : memref<16x1xf32, #tpu.memory_space<vmem>>, vector<16x1xf32>
    %32 = arith.truncf %29 : vector<32x8xf32> to vector<32x8xbf16>
    %cst_21 = arith.constant dense<0.000000e+00> : vector<16x8xf32>
    %33 = tpu.matmul %30, %32, %cst_21 {dimension_numbers = #tpu.dot_dimension_numbers<[1], [0], [0], [1], [0, 0, 1, 1], [], []>} : vector<16x32xbf16>, vector<32x8xbf16>, vector<16x8xf32> -> vector<16x8xf32>
    %34 = vector.broadcast %31 : vector<16x1xf32> to vector<16x8xf32>
    %35 = arith.addf %33, %34 : vector<16x8xf32>
    %cst_22 = arith.constant 0.000000e+00 : f32
    %36 = vector.broadcast %cst_22 : f32 to vector<16x8xf32>
    %37 = arith.maximumf %35, %36 : vector<16x8xf32>
    %c0_23 = arith.constant 0 : index
    %c0_24 = arith.constant 0 : index
    %38 = vector.load %arg10[%c0_23, %c0_24] : memref<1x16xbf16, #tpu.memory_space<vmem>>, vector<1x16xbf16>
    %c0_25 = arith.constant 0 : index
    %c0_26 = arith.constant 0 : index
    %39 = vector.load %arg11[%c0_25, %c0_26] : memref<1x1xf32, #tpu.memory_space<vmem>>, vector<1x1xf32>
    %40 = arith.truncf %37 : vector<16x8xf32> to vector<16x8xbf16>
    %cst_27 = arith.constant dense<0.000000e+00> : vector<1x8xf32>
    %41 = tpu.matmul %38, %40, %cst_27 {dimension_numbers = #tpu.dot_dimension_numbers<[1], [0], [0], [1], [0, 0, 1, 1], [], []>} : vector<1x16xbf16>, vector<16x8xbf16>, vector<1x8xf32> -> vector<1x8xf32>
    %42 = vector.broadcast %39 : vector<1x1xf32> to vector<1x8xf32>
    %43 = arith.addf %41, %42 : vector<1x8xf32>
    %c0_28 = arith.constant 0 : index
    %c0_29 = arith.constant 0 : index
    %44 = vector.load %arg12[%c0_28, %c0_29] : memref<1x8xf32, #tpu.memory_space<vmem>>, vector<1x8xf32>
    tpu.vector_store %arg12[%c0_28, %c0_29], %43 {strides = array<i32>} : memref<1x8xf32, #tpu.memory_space<vmem>>, vector<1x8xf32>,
    return
  }
  func.func @transform_0(%arg0: i32) -> (i32, i32) {
    %c0_i32 = arith.constant 0 : i32
    %c0_i32_0 = arith.constant 0 : i32
    return %c0_i32, %arg0 : i32, i32
  }
  func.func @transform_1(%arg0: i32) -> (i32, i32) {
    %c0_i32 = arith.constant 0 : i32
    %c0_i32_0 = arith.constant 0 : i32
    return %c0_i32, %arg0 : i32, i32
  }
  func.func @transform_2(%arg0: i32) -> (i32, i32) {
    %c0_i32 = arith.constant 0 : i32
    %c0_i32_0 = arith.constant 0 : i32
    %c0_i32_1 = arith.constant 0 : i32
    return %c0_i32, %c0_i32_0 : i32, i32
  }
  func.func @transform_3(%arg0: i32) -> (i32, i32) {
    %c0_i32 = arith.constant 0 : i32
    %c0_i32_0 = arith.constant 0 : i32
    %c0_i32_1 = arith.constant 0 : i32
    return %c0_i32, %c0_i32_0 : i32, i32
  }
  func.func @transform_4(%arg0: i32) -> (i32, i32) {
    %c0_i32 = arith.constant 0 : i32
    %c0_i32_0 = arith.constant 0 : i32
    %c0_i32_1 = arith.constant 0 : i32
    return %c0_i32, %c0_i32_0 : i32, i32
  }
  func.func @transform_5(%arg0: i32) -> (i32, i32) {
    %c0_i32 = arith.constant 0 : i32
    %c0_i32_0 = arith.constant 0 : i32
    %c0_i32_1 = arith.constant 0 : i32
    return %c0_i32, %c0_i32_0 : i32, i32
  }
  func.func @transform_6(%arg0: i32) -> (i32, i32) {
    %c0_i32 = arith.constant 0 : i32
    %c0_i32_0 = arith.constant 0 : i32
    %c0_i32_1 = arith.constant 0 : i32
    return %c0_i32, %c0_i32_0 : i32, i32
  }
  func.func @transform_7(%arg0: i32) -> (i32, i32) {
    %c0_i32 = arith.constant 0 : i32
    %c0_i32_0 = arith.constant 0 : i32
    %c0_i32_1 = arith.constant 0 : i32
    return %c0_i32, %c0_i32_0 : i32, i32
  }
  func.func @transform_8(%arg0: i32) -> (i32, i32) {
    %c0_i32 = arith.constant 0 : i32
    %c0_i32_0 = arith.constant 0 : i32
    %c0_i32_1 = arith.constant 0 : i32
    return %c0_i32, %c0_i32_0 : i32, i32
  }
  func.func @transform_9(%arg0: i32) -> (i32, i32) {
    %c0_i32 = arith.constant 0 : i32
    %c0_i32_0 = arith.constant 0 : i32
    %c0_i32_1 = arith.constant 0 : i32
    return %c0_i32, %c0_i32_0 : i32, i32
  }
  func.func @transform_10(%arg0: i32) -> (i32, i32) {
    %c0_i32 = arith.constant 0 : i32
    %c0_i32_0 = arith.constant 0 : i32
    %c0_i32_1 = arith.constant 0 : i32
    return %c0_i32, %c0_i32_0 : i32, i32
  }
  func.func @transform_11(%arg0: i32) -> (i32, i32) {
    %c0_i32 = arith.constant 0 : i32
    %c0_i32_0 = arith.constant 0 : i32
    return %c0_i32, %arg0 : i32, i32
  }
}

module attributes {stable_mosaic.version = 11 : i64} {
  func.func @_fused_mlp_kernel(%arg0: i32, %arg1: memref<1x8xi32, #tpu.memory_space<vmem>>, %arg2: memref<1x8xi32, #tpu.memory_space<vmem>>, %arg3: memref<16x50xbf16, #tpu.memory_space<vmem>>, %arg4: memref<16x100xbf16, #tpu.memory_space<vmem>>, %arg5: memref<32x16xbf16, #tpu.memory_space<vmem>>, %arg6: memref<32x16xbf16, #tpu.memory_space<vmem>>, %arg7: memref<32x1xf32, #tpu.memory_space<vmem>>, %arg8: memref<16x32xbf16, #tpu.memory_space<vmem>>, %arg9: memref<16x1xf32, #tpu.memory_space<vmem>>, %arg10: memref<1x16xbf16, #tpu.memory_space<vmem>>, %arg11: memref<1x1xf32, #tpu.memory_space<vmem>>, %arg12: memref<1x8xf32, #tpu.memory_space<vmem>>) attributes {dimension_semantics = [#tpu.dimension_semantics<parallel>], iteration_bounds = array<i64: 1>, scalar_prefetch = 0 : i64, scratch_operands = 0 : i64, tpu.core_type = #tpu.core_type<tc>, window_params = [{transform_indices = @transform_0, window_bounds = array<i64: 1, 8>}, {transform_indices = @transform_1, window_bounds = array<i64: 1, 8>}, {pipeline_mode = #tpu.pipeline_mode<synchronous>, transform_indices = @transform_2, window_bounds = array<i64: 16, 50>}, {pipeline_mode = #tpu.pipeline_mode<synchronous>, transform_indices = @transform_3, window_bounds = array<i64: 16, 100>}, {pipeline_mode = #tpu.pipeline_mode<synchronous>, transform_indices = @transform_4, window_bounds = array<i64: 32, 16>}, {pipeline_mode = #tpu.pipeline_mode<synchronous>, transform_indices = @transform_5, window_bounds = array<i64: 32, 16>}, {pipeline_mode = #tpu.pipeline_mode<synchronous>, transform_indices = @transform_6, window_bounds = array<i64: 32, 1>}, {pipeline_mode = #tpu.pipeline_mode<synchronous>, transform_indices = @transform_7, window_bounds = array<i64: 16, 32>}, {pipeline_mode = #tpu.pipeline_mode<synchronous>, transform_indices = @transform_8, window_bounds = array<i64: 16, 1>}, {pipeline_mode = #tpu.pipeline_mode<synchronous>, transform_indices = @transform_9, window_bounds = array<i64: 1, 16>}, {pipeline_mode = #tpu.pipeline_mode<synchronous>, transform_indices = @transform_10, window_bounds = array<i64: 1, 1>}, {transform_indices = @transform_11, window_bounds = array<i64: 1, 8>}]} {
    %c0 = arith.constant 0 : index
    %c0_0 = arith.constant 0 : index
    %0 = vector.load %arg1[%c0, %c0_0] : memref<1x8xi32, #tpu.memory_space<vmem>>, vector<1x8xi32>
    %c0_1 = arith.constant 0 : index
    %c0_2 = arith.constant 0 : index
    %1 = vector.load %arg2[%c0_1, %c0_2] : memref<1x8xi32, #tpu.memory_space<vmem>>, vector<1x8xi32>
    %2 = tpu.iota {dimensions = array<i32: 0>} : vector<50x8xi32>
    %3 = vector.broadcast %0 : vector<1x8xi32> to vector<50x8xi32>
    %4 = arith.cmpi eq, %2, %3 : vector<50x8xi32>
    %5 = arith.extui %4 : vector<50x8xi1> to vector<50x8xi32>
    %6 = arith.sitofp %5 : vector<50x8xi32> to vector<50x8xf32>
    %7 = arith.truncf %6 : vector<50x8xf32> to vector<50x8xbf16>
    %8 = tpu.iota {dimensions = array<i32: 0>} : vector<100x8xi32>
    %9 = vector.broadcast %1 : vector<1x8xi32> to vector<100x8xi32>
    %10 = arith.cmpi eq, %8, %9 : vector<100x8xi32>
    %11 = arith.extui %10 : vector<100x8xi1> to vector<100x8xi32>
    %12 = arith.sitofp %11 : vector<100x8xi32> to vector<100x8xf32>
    %13 = arith.truncf %12 : vector<100x8xf32> to vector<100x8xbf16>
    %c0_3 = arith.constant 0 : index
    %c0_4 = arith.constant 0 : index
    %14 = vector.load %arg3[%c0_3, %c0_4] : memref<16x50xbf16, #tpu.memory_space<vmem>>, vector<16x50xbf16>
    %cst = arith.constant dense<0.000000e+00> : vector<16x8xf32>
    %15 = tpu.matmul %14, %7, %cst {dimension_numbers = #tpu.dot_dimension_numbers<[1], [0], [0], [1], [0, 0, 1, 1], [], []>} : vector<16x50xbf16>, vector<50x8xbf16>, vector<16x8xf32> -> vector<16x8xf32>
    %16 = arith.truncf %15 : vector<16x8xf32> to vector<16x8xbf16>
    %c0_5 = arith.constant 0 : index
    %c0_6 = arith.constant 0 : index
    %17 = vector.load %arg4[%c0_5, %c0_6] : memref<16x100xbf16, #tpu.memory_space<vmem>>, vector<16x100xbf16>
    %cst_7 = arith.constant dense<0.000000e+00> : vector<16x8xf32>
    %18 = tpu.matmul %17, %13, %cst_7 {dimension_numbers = #tpu.dot_dimension_numbers<[1], [0], [0], [1], [0, 0, 1, 1], [], []>} : vector<16x100xbf16>, vector<100x8xbf16>, vector<16x8xf32> -> vector<16x8xf32>
    %19 = arith.truncf %18 : vector<16x8xf32> to vector<16x8xbf16>
    %c0_8 = arith.constant 0 : index
    %c0_9 = arith.constant 0 : index
    %20 = vector.load %arg5[%c0_8, %c0_9] : memref<32x16xbf16, #tpu.memory_space<vmem>>, vector<32x16xbf16>
    %c0_10 = arith.constant 0 : index
    %c0_11 = arith.constant 0 : index
    %21 = vector.load %arg6[%c0_10, %c0_11] : memref<32x16xbf16, #tpu.memory_space<vmem>>, vector<32x16xbf16>
    %c0_12 = arith.constant 0 : index
    %c0_13 = arith.constant 0 : index
    %22 = vector.load %arg7[%c0_12, %c0_13] : memref<32x1xf32, #tpu.memory_space<vmem>>, vector<32x1xf32>
    %cst_14 = arith.constant dense<0.000000e+00> : vector<32x8xf32>
    %23 = tpu.matmul %20, %16, %cst_14 {dimension_numbers = #tpu.dot_dimension_numbers<[1], [0], [0], [1], [0, 0, 1, 1], [], []>} : vector<32x16xbf16>, vector<16x8xbf16>, vector<32x8xf32> -> vector<32x8xf32>
    %cst_15 = arith.constant dense<0.000000e+00> : vector<32x8xf32>
    %24 = tpu.matmul %21, %19, %cst_15 {dimension_numbers = #tpu.dot_dimension_numbers<[1], [0], [0], [1], [0, 0, 1, 1], [], []>} : vector<32x16xbf16>, vector<16x8xbf16>, vector<32x8xf32> -> vector<32x8xf32>
    %25 = arith.addf %23, %24 : vector<32x8xf32>
    %26 = vector.broadcast %22 : vector<32x1xf32> to vector<32x8xf32>
    %27 = arith.addf %25, %26 : vector<32x8xf32>
    %cst_16 = arith.constant 0.000000e+00 : f32
    %28 = vector.broadcast %cst_16 : f32 to vector<32x8xf32>
    %29 = arith.maximumf %27, %28 : vector<32x8xf32>
    %c0_17 = arith.constant 0 : index
    %c0_18 = arith.constant 0 : index
    %30 = vector.load %arg8[%c0_17, %c0_18] : memref<16x32xbf16, #tpu.memory_space<vmem>>, vector<16x32xbf16>
    %c0_19 = arith.constant 0 : index
    %c0_20 = arith.constant 0 : index
    %31 = vector.load %arg9[%c0_19, %c0_20] : memref<16x1xf32, #tpu.memory_space<vmem>>, vector<16x1xf32>
    %32 = arith.truncf %29 : vector<32x8xf32> to vector<32x8xbf16>
    %cst_21 = arith.constant dense<0.000000e+00> : vector<16x8xf32>
    %33 = tpu.matmul %30, %32, %cst_21 {dimension_numbers = #tpu.dot_dimension_numbers<[1], [0], [0], [1], [0, 0, 1, 1], [], []>} : vector<16x32xbf16>, vector<32x8xbf16>, vector<16x8xf32> -> vector<16x8xf32>
    %34 = vector.broadcast %31 : vector<16x1xf32> to vector<16x8xf32>
    %35 = arith.addf %33, %34 : vector<16x8xf32>
    %cst_22 = arith.constant 0.000000e+00 : f32
    %36 = vector.broadcast %cst_22 : f32 to vector<16x8xf32>
    %37 = arith.maximumf %35, %36 : vector<16x8xf32>
    %c0_23 = arith.constant 0 : index
    %c0_24 = arith.constant 0 : index
    %38 = vector.load %arg10[%c0_23, %c0_24] : memref<1x16xbf16, #tpu.memory_space<vmem>>, vector<1x16xbf16>
    %c0_25 = arith.constant 0 : index
    %c0_26 = arith.constant 0 : index
    %39 = vector.load %arg11[%c0_25, %c0_26] : memref<1x1xf32, #tpu.memory_space<vmem>>, vector<1x1xf32>
    %40 = arith.truncf %37 : vector<16x8xf32> to vector<16x8xbf16>
    %cst_27 = arith.constant dense<0.000000e+00> : vector<1x8xf32>
    %41 = tpu.matmul %38, %40, %cst_27 {dimension_numbers = #tpu.dot_dimension_numbers<[1], [0], [0], [1], [0, 0, 1, 1], [], []>} : vector<1x16xbf16>, vector<16x8xbf16>, vector<1x8xf32> -> vector<1x8xf32>
    %42 = vector.broadcast %39 : vector<1x1xf32> to vector<1x8xf32>
    %43 = arith.addf %41, %42 : vector<1x8xf32>
    %c0_28 = arith.constant 0 : index
    %c0_29 = arith.constant 0 : index
    %44 = vector.load %arg12[%c0_28, %c0_29] : memref<1x8xf32, #tpu.memory_space<vmem>>, vector<1x8xf32>
    tpu.vector_store %arg12[%c0_28, %c0_29], %43 {strides = array<i32>} : memref<1x8xf32, #tpu.memory_space<vmem>>, vector<1x8xf32>,
    return
  }
  func.func @transform_0(%arg0: i32) -> (i32, i32) {
    %c0_i32 = arith.constant 0 : i32
    %c0_i32_0 = arith.constant 0 : i32
    return %c0_i32, %arg0 : i32, i32
  }
  func.func @transform_1(%arg0: i32) -> (i32, i32) {
    %c0_i32 = arith.constant 0 : i32
    %c0_i32_0 = arith.constant 0 : i32
    return %c0_i32, %arg0 : i32, i32
  }
  func.func @transform_2(%arg0: i32) -> (i32, i32) {
    %c0_i32 = arith.constant 0 : i32
    %c0_i32_0 = arith.constant 0 : i32
    %c0_i32_1 = arith.constant 0 : i32
    return %c0_i32, %c0_i32_0 : i32, i32
  }
  func.func @transform_3(%arg0: i32) -> (i32, i32) {
    %c0_i32 = arith.constant 0 : i32
    %c0_i32_0 = arith.constant 0 : i32
    %c0_i32_1 = arith.constant 0 : i32
    return %c0_i32, %c0_i32_0 : i32, i32
  }
  func.func @transform_4(%arg0: i32) -> (i32, i32) {
    %c0_i32 = arith.constant 0 : i32
    %c0_i32_0 = arith.constant 0 : i32
    %c0_i32_1 = arith.constant 0 : i32
    return %c0_i32, %c0_i32_0 : i32, i32
  }
  func.func @transform_5(%arg0: i32) -> (i32, i32) {
    %c0_i32 = arith.constant 0 : i32
    %c0_i32_0 = arith.constant 0 : i32
    %c0_i32_1 = arith.constant 0 : i32
    return %c0_i32, %c0_i32_0 : i32, i32
  }
  func.func @transform_6(%arg0: i32) -> (i32, i32) {
    %c0_i32 = arith.constant 0 : i32
    %c0_i32_0 = arith.constant 0 : i32
    %c0_i32_1 = arith.constant 0 : i32
    return %c0_i32, %c0_i32_0 : i32, i32
  }
  func.func @transform_7(%arg0: i32) -> (i32, i32) {
    %c0_i32 = arith.constant 0 : i32
    %c0_i32_0 = arith.constant 0 : i32
    %c0_i32_1 = arith.constant 0 : i32
    return %c0_i32, %c0_i32_0 : i32, i32
  }
  func.func @transform_8(%arg0: i32) -> (i32, i32) {
    %c0_i32 = arith.constant 0 : i32
    %c0_i32_0 = arith.constant 0 : i32
    %c0_i32_1 = arith.constant 0 : i32
    return %c0_i32, %c0_i32_0 : i32, i32
  }
  func.func @transform_9(%arg0: i32) -> (i32, i32) {
    %c0_i32 = arith.constant 0 : i32
    %c0_i32_0 = arith.constant 0 : i32
    %c0_i32_1 = arith.constant 0 : i32
    return %c0_i32, %c0_i32_0 : i32, i32
  }
  func.func @transform_10(%arg0: i32) -> (i32, i32) {
    %c0_i32 = arith.constant 0 : i32
    %c0_i32_0 = arith.constant 0 : i32
    %c0_i32_1 = arith.constant 0 : i32
    return %c0_i32, %c0_i32_0 : i32, i32
  }
  func.func @transform_11(%arg0: i32) -> (i32, i32) {
    %c0_i32 = arith.constant 0 : i32
    %c0_i32_0 = arith.constant 0 : i32
    return %c0_i32, %arg0 : i32, i32
  }
}

</mosaic_0001>

<bundles_post_ra>
// kernel: tpu_custom_call.1
= control target key start
LH: loop header
LB: loop body
LE: loop exit
PB: predicated region body
PF: predicated region fallthrough
CT: control target
= control target key end

     0   :  { %s927_s0 = inlined_call_operand.vmem [shape: s32[1,8], index: 0, kind: input, shape index: {}]   ;;  %s928_s1 = inlined_call_operand.vmem [shape: s32[1,8], index: 1, kind: input, shape index: {}]   ;;  %s929_s2 = inlined_call_operand.vmem [shape: bf16[16,50], index: 2, kind: input, shape index: {}]   ;;  %s930_s3 = inlined_call_operand.vmem [shape: bf16[16,100], index: 3, kind: input, shape index: {}]   ;;  %s931_s4 = inlined_call_operand.vmem [shape: bf16[32,16], index: 4, kind: input, shape index: {}]   ;;  %s932_s5 = inlined_call_operand.vmem [shape: bf16[32,16], index: 5, kind: input, shape index: {}]   ;;  %s933_s6 = inlined_call_operand.vmem [shape: f32[32,1], index: 6, kind: input, shape index: {}]   ;;  %s934_s7 = inlined_call_operand.vmem [shape: bf16[16,32], index: 7, kind: input, shape index: {}]   ;;  %s935_s8 = inlined_call_operand.vmem [shape: f32[16,1], index: 8, kind: input, shape index: {}]   ;;  %s936_s9 = inlined_call_operand.vmem [shape: bf16[1,16], index: 9, kind: input, shape index: {}]   ;;  %s937_s10 = inlined_call_operand.<no memory space> [shape: f32[1,1], index: 10, kind: input, shape index: {}]   ;;  %s938_s11 = inlined_call_operand.hbm [shape: f32[1,8], index: 11, kind: output, shape index: {}]  }
   0x1   :  { %v16_v0 = vstv %s937_s10 }
   0x2   :  { %17 = vst [vmem:[#allocation2] sm:$0x1] %v16_v0 }
   0x3   :  { %v44_v1 = vlaneseq  ;;  %v738_v2 = vmov 0.0   ;;  %v810_v3 = vld [vmem:[%s928_s1] ss:$0 sm:$0xff]  ;;  %vm739_vm0 = vmmov 0   ;;  %v740_v11 = vmov 1.0|1.0  }
   0x4   :  { %652 = vmatprep.subr.bf16.mxu1 %v738_v2  ;;  %640 = vmatprep.subr.bf16.mxu0 %v738_v2  ;;  %v561_v9 = vld [vmem:[%s927_s0] ss:$0 sm:$0xff] }
   0x5   :  { %v813_v4 = vshrl.u32 %v44_v1, 7  ;;  %666 = vmatprep.mubr.msk.bf16.mxu1 %vm739_vm0, %v738_v2  ;;  %648 = vmatprep.mubr.msk.bf16.mxu0 %vm739_vm0, %v738_v2 }
   0x7   :  { %v46_v5 = vadd.s32 8, %v813_v4  ;;  %vm91_vm1 = vcmp.eq.s32.totalorder %v813_v4, %v810_v3  ;;  %v47_v6 = vadd.s32 16, %v813_v4  ;;  %v48_v7 = vadd.s32 24, %v813_v4 }
   0x8   :  { %v49_v8 = vadd.s32 32, %v813_v4  ;;  %v50_v10 = vadd.s32 40, %v813_v4  ;;  %vm56_vm7 = vcmp.eq.s32.totalorder %v813_v4, %v561_v9  ;;  %v51_v12 = vadd.s32 48, %v813_v4 }
   0x9   :  { %vm92_vm2 = vcmp.eq.s32.totalorder %v46_v5, %v810_v3  ;;  %vm93_vm3 = vcmp.eq.s32.totalorder %v47_v6, %v810_v3  ;;  %vm94_vm4 = vcmp.eq.s32.totalorder %v48_v7, %v810_v3  ;;  %vm57_vm8 = vcmp.eq.s32.totalorder %v46_v5, %v561_v9 }
   0xa   :  { %vm592_vm5 = vmpackc.low %vm92_vm2, %vm91_vm1  ;;  %vm95_vm9 = vcmp.eq.s32.totalorder %v49_v8, %v810_v3  ;;  %vm96_vm10 = vcmp.eq.s32.totalorder %v50_v10, %v810_v3  ;;  %v81_v13 = vadd.s32 56, %v813_v4  ;;  %vm58_vm11 = vcmp.eq.s32.totalorder %v47_v6, %v561_v9 }
   0xb   :  { %653 = vmatpush3.bf16.msk.msra.mxu1 %vm592_vm5, %v740_v11  ;;  %vm594_vm6 = vmpackc.low %vm94_vm4, %vm93_vm3  ;;  %vm59_vm12 = vcmp.eq.s32.totalorder %v48_v7, %v561_v9  ;;  %vm62_vm14 = vcmp.eq.s32.totalorder %v51_v12, %v561_v9  ;;  %v82_v14 = vadd.s32 64, %v813_v4  ;;  %vm97_vm1 = vcmp.eq.s32.totalorder %v51_v12, %v810_v3 }
   0xc   :  { %654 = vmatprep.subr.bf16.mxu1 %v738_v2  ;;  %vm584_vm13 = vmpackc.low %vm57_vm8, %vm56_vm7  ;;  %vm98_vm2 = vcmp.eq.s32.totalorder %v81_v13, %v810_v3  ;;  %v83_v15 = vadd.s32 72, %v813_v4  ;;  %v86_v16 = vadd.s32 96, %v813_v4  ;;  %vm60_vm4 = vcmp.eq.s32.totalorder %v49_v8, %v561_v9 }
   0xd   :  { %vm596_vm15 = vmpackc.low %vm96_vm10, %vm95_vm9  ;;  %641 = vmatpush3.bf16.msk.msra.mxu0 %vm584_vm13, %v740_v11  ;;  %vm61_vm5 = vcmp.eq.s32.totalorder %v50_v10, %v561_v9  ;;  %v568_v17 = vsel %vm62_vm14, 1.0, %v738_v2 }
   0xe   :  { %642 = vmatprep.subr.bf16.mxu0 %v738_v2  ;;  %vm586_vm3 = vmpackc.low %vm59_vm12, %vm58_vm11 }
   0xf   :  { %655 = vmatpush3.bf16.msk.msra.mxu1 %vm594_vm6, %v740_v11 }
  0x10   :  { %656 = vmatprep.subr.bf16.mxu1 %v738_v2 }
  0x13   :  { %657 = vmatpush3.bf16.msk.msra.mxu1 %vm596_vm15, %v740_v11 }
  0x14   :  { %18 = vsyncpa [#allocation4], 0  ;;  %658 = vmatprep.subr.bf16.mxu1 %v738_v2  ;;  %vm99_vm7 = vcmp.eq.s32.totalorder %v82_v14, %v810_v3  ;;  %643 = vmatpush3.bf16.msk.msra.mxu0 %vm586_vm3, %v740_v11  ;;  %vm100_vm8 = vcmp.eq.s32.totalorder %v83_v15, %v810_v3  ;;  %v84_v18 = vadd.s32 80, %v813_v4  ;;  %v85_v19 = vadd.s32 88, %v813_v4  ;;  %v708_v23 = vld [vmem:[%s929_s2] sm:$0xff]   ;;  %v261_v29 = vld [vmem:[%s933_s6 + $0x10] sm:$0xff] }
  0x15   :  { %vm598_vm6 = vmpackc.low %vm98_vm2, %vm97_vm1  ;;  %644 = vmatprep.subr.bf16.mxu0 %v738_v2  ;;  %v80_v20 = vpack.c.bf16 %v568_v17, %v568_v17  ;;  %vm103_vm10 = vcmp.eq.s32.totalorder %v86_v16, %v810_v3  ;;  %vm148_vm11 = vcmask 1040384   ;;  %vm144_vm1 = vcmask 408576   ;;  %v707_v26 = vld [vmem:[%s930_s3] sm:$0xff]   ;;  %v260_v31 = vld [vmem:[%s933_s6 + $0x8] sm:$0xff] }
  0x16   :  { %vm588_vm9 = vmpackc.low %vm61_vm5, %vm60_vm4  ;;  %vm101_vm13 = vcmp.eq.s32.totalorder %v84_v18, %v810_v3  ;;  %vm102_vm14 = vcmp.eq.s32.totalorder %v85_v19, %v810_v3  ;;  %v582_v21 = vsel %vm103_vm10, 1.0, %v738_v2  ;;  %vm205_vm2 = vcmask 1041408   ;;  %v709_v27 = vld [vmem:[%s932_s5] sm:$0xff]   ;;  %v262_v32 = vld [vmem:[%s933_s6 + $0x18] sm:$0xff] }
  0x17   :  { %659 = vmatpush3.bf16.msk.msra.mxu1 %vm598_vm6, %v740_v11  ;;  %vm600_vm12 = vmpackc.low %vm100_vm8, %vm99_vm7  ;;  %v150_v22 = vsel %vm148_vm11, %v80_v20, 0  ;;  %v136_v24 = vpack.c.bf16 %v582_v21, %v582_v21  ;;  %vm201_vm3 = vcmask 818176   ;;  %vm273_vm4 = vcmask 130048   ;;  %v259_v28 = vld [vmem:[%s933_s6] sm:$0xff]  ;;  %v425_v34 = vld [vmem:[%s935_s8 + $0x8] sm:$0xff] }
  0x18   :  { %660 = vmatprep.subr.bf16.mxu1 %v738_v2  ;;  %645 = vmatpush3.bf16.msk.msra.mxu0 %vm588_vm9, %v740_v11  ;;  %vm602_vm15 = vmpackc.low %vm102_vm14, %vm101_vm13  ;;  %v741_v30 = vmov 0   ;;  %v424_v33 = vld [vmem:[%s935_s8] sm:$0xff]  ;;  %v710_v46 = vld [vmem:[%s932_s5 + $0x8] sm:$0xff]   ;;  %v500_v17 = vsub.s32 0, %v813_v4  ;;  %vm545_vm5 = vcmask 57344  }
  0x19   :  { %646 = vmatprep.subr.bf16.mxu0 %v738_v2  ;;  %v207_v25 = vsel %vm205_vm2, %v136_v24, 0  ;;  %705 = vset.pattern.permute.xlu0 %v741_v30  ;;  %v491_v35 = vld [vmem:[#allocation2] sm:$0x1]  ;;  %v712_v48 = vld [vmem:[%s931_s4 + $0x8] sm:$0xff]  }
  0x1a   :  { %706 = vset.pattern.permute.xlu1 %v741_v30  ;;  %396 = vperm.xlu0 %705, %v259_v28   ;;  %v711_v47 = vld [vmem:[%s931_s4] sm:$0xff]  }
  0x1b   :  { %661 = vmatpush3.bf16.msk.msra.mxu1 %vm600_vm12, %v740_v11  ;;  %406 = vperm.xlu1 %706, %v261_v29   ;;  %v713_v5 = vld [vmem:[%s934_s7] sm:$0xff]   ;;  %s742_s7 = smov [#allocation3]  }
  0x1c   :  { %662 = vmatprep.subr.bf16.mxu1 %v738_v2  ;;  %647 = vmatpush3.bf16.msra.mxu0 %v150_v22  ;;  %s553_s0 = sshll.u32 %s742_s7, 4  ;;  %s554_s0 = int_to_ptr.vmem [resolvable:$true] %s553_s0 }
  0x1d   :  { %s714_s21 = scalar_lea.vmem %s554_s0, 16  ;;  %s718_s22 = scalar_lea.vmem %s554_s0, 32 }
  0x1e   :  { %401 = vperm.xlu0 %705, %v260_v31   ;;  %p715_p0 = scmp.ne.s32.totalorder %s554_s0, %s714_s21  ;;  %p719_p1 = scmp.lt.s32.totalorder %s554_s0, %s554_s0 }
  0x1f   :  { %663 = vmatpush3.bf16.msk.msra.mxu1 %vm602_vm15, %v740_v11  ;;  %649 = vmatmul.mubr.msk.bf16.vlgmr.msra.gmra.mrb[0].mxu0 %vm144_vm1, %v708_v23  ;;  %p720_p2 = scmp.lt.s32.totalorder %s718_s22, %s714_s21 }
  0x20   :  { %664 = vmatprep.subr.bf16.mxu1 %v738_v2  ;;  %672 = vmatprep.mubr.msk.bf16.mxu0 %vm273_vm4, %v709_v27 }
  0x21   :  { %411 = vperm.xlu1 %706, %v262_v32   ;;  %p721_p3 = por %p720_p2, %p719_p1 }
  0x22   :  { %430 = vperm.xlu0 %705, %v424_v33  }
  0x23   :  { %665 = vmatpush3.bf16.msra.mxu1 %v207_v25  ;;  %p722_p4 = pnand %p721_p3, %p715_p0 }
  0x24   :  { %682 = vmatprep.subr.bf16.mxu1 %v738_v2 }
  0x25   :  { %435 = vperm.xlu1 %706, %v425_v34  }
  0x26   :  { %667 = vmatmul.mubr.msk.bf16.vlgmr.msra.gmra.mrb[0].mxu1 %vm201_vm3, %v707_v26  ;;  %495 = vperm.xlu0 %705, %v491_v35  }
  0x27   :  { %686 = vmatprep.mubr.msk.bf16.mxu1 %vm739_vm0, %v738_v2 }
  0x99   :  { %v397_v50 = vpop.permute.xlu0 %396 }
  0x9a   :  { %v407_v49 = vpop.permute.xlu1 %406 }
  0x9d   :  { %v402_v57 = vpop.permute.xlu0 %401 }
  0xa0   :  { %v412_v54 = vpop.permute.xlu1 %411 }
  0xa1   :  { %v431_v6 = vpop.permute.xlu0 %430 }
  0xa4   :  { %v436_v10 = vpop.permute.xlu1 %435 }
  0xa5   :  { %v496_v18 = vpop.permute.xlu0 %495 }
  0xa6   :  { %v501_v19 = vrot.slane %v496_v18, %v500_v17 }
  0xf2   :  { %v186_v36 = vpop.f32.mrb[0].mxu0 }
  0xf3   :  { %v650_v37 = vpop.f32.mrb[1].mxu0 }
  0xf4   :  { %v189_v38 = vpop.f32.mrb[2].mxu0 }
  0xf5   :  { %v193_v39 = vpack.c.bf16 %v189_v38, %v186_v36  ;;  %v651_v40 = vpop.f32.mrb[3].mxu0 }
  0xf9   :  { %v243_v41 = vpop.f32.mrb[0].mxu1 }
  0xfa   :  { %v668_v42 = vpop.f32.mrb[1].mxu1 }
  0xfb   :  { %v246_v43 = vpop.f32.mrb[2].mxu1 }
  0xfc   :  { %v250_v44 = vpack.c.bf16 %v246_v43, %v243_v41  ;;  %v669_v45 = vpop.f32.mrb[3].mxu1 }
  0xfe   :  { %670 = vmatprep.subr.bf16.mxu0 %v250_v44 }
  0xff   :  { %671 = vmatpush3.bf16.msra.mxu0 %v250_v44 }
 0x100   :  { %676 = vmatprep.subr.bf16.mxu0 %v193_v39 }
 0x102   :  { %673 = vmatmul.mubr.msk.bf16.vlgmr.msra.gmra.mrb[4].mxu0 %vm273_vm4, %v710_v46 }
 0x103   :  { %677 = vmatpush3.bf16.msra.mxu0 %v193_v39  ;;  %678 = vmatprep.mubr.msk.bf16.mxu0 %vm273_vm4, %v711_v47 }
 0x104   :  { %690 = vmatprep.subr.bf16.mxu0 %v738_v2 }
 0x10e   :  { %679 = vmatmul.mubr.msk.bf16.vlgmr.msra.gmra.mrb[4].mxu0 %vm273_vm4, %v712_v48 }
 0x10f   :  { %692 = vmatprep.mubr.msk.bf16.mxu0 %vm739_vm0, %v738_v2  ;;  %vm443_vm0 = vcmask 261120  }
 0x1e1   :  { %v680_v51 = vpop.f32.mrb[4].mxu0 }
 0x1e2   :  { %v416_v52 = vadd.f32 %v680_v51, %v407_v49  ;;  %v379_v53 = vpop.f32.mrb[5].mxu0 }
 0x1e3   :  { %v414_v55 = vadd.f32 %v397_v50, %v379_v53  ;;  %v681_v56 = vpop.f32.mrb[6].mxu0 }
 0x1e4   :  { %v417_v58 = vadd.f32 %v681_v56, %v412_v54  ;;  %v382_v59 = vpop.f32.mrb[7].mxu0  ;;  %v420_v61 = vmax.f32 %v416_v52, 0.0 }
 0x1e5   :  { %v415_v60 = vadd.f32 %v402_v57, %v382_v59  ;;  %v418_v63 = vmax.f32 %v414_v55, 0.0 }
 0x1e6   :  { %v421_v62 = vmax.f32 %v417_v58, 0.0 }
 0x1e7   :  { %v419_v0 = vmax.f32 %v415_v60, 0.0 }
 0x1e8   :  { %v427_v1 = vpack.c.bf16 %v421_v62, %v420_v61 }
 0x1e9   :  { %v426_v3 = vpack.c.bf16 %v419_v0, %v418_v63 }
 0x1eb   :  { %683 = vmatpush3.bf16.msra.mxu1 %v426_v3 }
 0x1ec   :  { %684 = vmatprep.subr.bf16.mxu1 %v738_v2  ;;  %v490_v2 = vld [vmem:[%s936_s9] sm:$0x1] }
 0x1ef   :  { %685 = vmatpush3.bf16.msra.mxu1 %v427_v1 }
 0x1f2   :  { %687 = vmatmul.mubr.msk.bf16.vlgmr.msra.gmra.mrb[4].mxu1 %vm443_vm0, %v713_v5 }
 0x2c5   :  { %v481_v7 = vpop.f32.mrb[4].mxu1 }
 0x2c6   :  { %v482_v8 = vadd.f32 %v481_v7, %v431_v6  ;;  %v688_v9 = vpop.f32.mrb[5].mxu1 }
 0x2c7   :  { %v484_v11 = vpop.f32.mrb[6].mxu1 }
 0x2c8   :  { %v485_v12 = vadd.f32 %v484_v11, %v436_v10  ;;  %v689_v13 = vpop.f32.mrb[7].mxu1  ;;  %v488_v14 = vmax.f32 %v482_v8, 0.0 }
 0x2ca   :  { %v489_v15 = vmax.f32 %v485_v12, 0.0 }
 0x2cc   :  { %v492_v16 = vpack.c.bf16 %v489_v15, %v488_v14 }
 0x2ce   :  { %691 = vmatpush3.bf16.msra.mxu0 %v492_v16 }
 0x2d1   :  { %693 = vmatmul.mubr.msk.bf16.vlgmr.msra.gmra.mrb[8].mxu0 %vm273_vm4, %v490_v2 }
 0x3a4   :  { %v539_v20 = vpop.f32.mrb[8].mxu0 }
 0x3a5   :  { %v540_v21 = vadd.f32 %v539_v20, %v501_v19  ;;  %v694_v22 = vpop.f32.mrb[9].mxu0 }
 0x3a6   :  { %v542_v23 = vpop.f32.mrb[10].mxu0 }
 0x3a7   :  { %v695_v24 = vpop.f32.mrb[11].mxu0  ;;  %546 = vst.msk [vmem:[#allocation3] sm:$0x1] %vm545_vm5, %v540_v21 }
 0x3a8   :  { %725 = shalt.err (!%p722_p4)
}
 0x3a9   :  { %s726_s2 = scalar_lea.hbm %s938_s11, 16 }
 0x3aa   :  { %p727_p5 = scmp.ne.s32.totalorder %s938_s11, %s726_s2  ;;  %p730_p6 = scmp.lt.u32.totalorder %s726_s2, %s938_s11 }
 0x3ac   :  { %p732_p7 = pnand %p730_p6, %p727_p5 }
 0x3ae   :  { %735 = shalt.err (!%p732_p7)
}
 0x3af   :  { %556 = dma.vmem_to_hbm [thread:$0]  %s554_s0, 16, %s938_s11, [#allocation4]  }
 0x3b0   :  { %736 = dma.done.wait [#allocation4], 16  }
 0x3b1   :  { %737 = vsyncadd [#allocation4], 4294967280 }
 0x3b2   :  { %560 = vsyncpa [#allocation4], 1 }

// kernel: tpu_custom_call.1
= control target key start
LH: loop header
LB: loop body
LE: loop exit
PB: predicated region body
PF: predicated region fallthrough
CT: control target
= control target key end

     0   :  { %s927_s0 = inlined_call_operand.vmem [shape: s32[1,8], index: 0, kind: input, shape index: {}]   ;;  %s928_s1 = inlined_call_operand.vmem [shape: s32[1,8], index: 1, kind: input, shape index: {}]   ;;  %s929_s2 = inlined_call_operand.vmem [shape: bf16[16,50], index: 2, kind: input, shape index: {}]   ;;  %s930_s3 = inlined_call_operand.vmem [shape: bf16[16,100], index: 3, kind: input, shape index: {}]   ;;  %s931_s4 = inlined_call_operand.vmem [shape: bf16[32,16], index: 4, kind: input, shape index: {}]   ;;  %s932_s5 = inlined_call_operand.vmem [shape: bf16[32,16], index: 5, kind: input, shape index: {}]   ;;  %s933_s6 = inlined_call_operand.vmem [shape: f32[32,1], index: 6, kind: input, shape index: {}]   ;;  %s934_s7 = inlined_call_operand.vmem [shape: bf16[16,32], index: 7, kind: input, shape index: {}]   ;;  %s935_s8 = inlined_call_operand.vmem [shape: f32[16,1], index: 8, kind: input, shape index: {}]   ;;  %s936_s9 = inlined_call_operand.vmem [shape: bf16[1,16], index: 9, kind: input, shape index: {}]   ;;  %s937_s10 = inlined_call_operand.<no memory space> [shape: f32[1,1], index: 10, kind: input, shape index: {}]   ;;  %s938_s11 = inlined_call_operand.hbm [shape: f32[1,8], index: 11, kind: output, shape index: {}]  }
   0x1   :  { %v16_v0 = vstv %s937_s10 }
   0x2   :  { %17 = vst [vmem:[#allocation2] sm:$0x1] %v16_v0 }
   0x3   :  { %v44_v1 = vlaneseq  ;;  %v738_v2 = vmov 0.0   ;;  %v810_v3 = vld [vmem:[%s928_s1] ss:$0 sm:$0xff]  ;;  %vm739_vm0 = vmmov 0   ;;  %v740_v11 = vmov 1.0|1.0  }
   0x4   :  { %652 = vmatprep.subr.bf16.mxu1 %v738_v2  ;;  %640 = vmatprep.subr.bf16.mxu0 %v738_v2  ;;  %v561_v9 = vld [vmem:[%s927_s0] ss:$0 sm:$0xff] }
   0x5   :  { %v813_v4 = vshrl.u32 %v44_v1, 7  ;;  %666 = vmatprep.mubr.msk.bf16.mxu1 %vm739_vm0, %v738_v2  ;;  %648 = vmatprep.mubr.msk.bf16.mxu0 %vm739_vm0, %v738_v2 }
   0x7   :  { %v46_v5 = vadd.s32 8, %v813_v4  ;;  %vm91_vm1 = vcmp.eq.s32.totalorder %v813_v4, %v810_v3  ;;  %v47_v6 = vadd.s32 16, %v813_v4  ;;  %v48_v7 = vadd.s32 24, %v813_v4 }
   0x8   :  { %v49_v8 = vadd.s32 32, %v813_v4  ;;  %v50_v10 = vadd.s32 40, %v813_v4  ;;  %vm56_vm7 = vcmp.eq.s32.totalorder %v813_v4, %v561_v9  ;;  %v51_v12 = vadd.s32 48, %v813_v4 }
   0x9   :  { %vm92_vm2 = vcmp.eq.s32.totalorder %v46_v5, %v810_v3  ;;  %vm93_vm3 = vcmp.eq.s32.totalorder %v47_v6, %v810_v3  ;;  %vm94_vm4 = vcmp.eq.s32.totalorder %v48_v7, %v810_v3  ;;  %vm57_vm8 = vcmp.eq.s32.totalorder %v46_v5, %v561_v9 }
   0xa   :  { %vm592_vm5 = vmpackc.low %vm92_vm2, %vm91_vm1  ;;  %vm95_vm9 = vcmp.eq.s32.totalorder %v49_v8, %v810_v3  ;;  %vm96_vm10 = vcmp.eq.s32.totalorder %v50_v10, %v810_v3  ;;  %v81_v13 = vadd.s32 56, %v813_v4  ;;  %vm58_vm11 = vcmp.eq.s32.totalorder %v47_v6, %v561_v9 }
   0xb   :  { %653 = vmatpush3.bf16.msk.msra.mxu1 %vm592_vm5, %v740_v11  ;;  %vm594_vm6 = vmpackc.low %vm94_vm4, %vm93_vm3  ;;  %vm59_vm12 = vcmp.eq.s32.totalorder %v48_v7, %v561_v9  ;;  %vm62_vm14 = vcmp.eq.s32.totalorder %v51_v12, %v561_v9  ;;  %v82_v14 = vadd.s32 64, %v813_v4  ;;  %vm97_vm1 = vcmp.eq.s32.totalorder %v51_v12, %v810_v3 }
   0xc   :  { %654 = vmatprep.subr.bf16.mxu1 %v738_v2  ;;  %vm584_vm13 = vmpackc.low %vm57_vm8, %vm56_vm7  ;;  %vm98_vm2 = vcmp.eq.s32.totalorder %v81_v13, %v810_v3  ;;  %v83_v15 = vadd.s32 72, %v813_v4  ;;  %v86_v16 = vadd.s32 96, %v813_v4  ;;  %vm60_vm4 = vcmp.eq.s32.totalorder %v49_v8, %v561_v9 }
   0xd   :  { %vm596_vm15 = vmpackc.low %vm96_vm10, %vm95_vm9  ;;  %641 = vmatpush3.bf16.msk.msra.mxu0 %vm584_vm13, %v740_v11  ;;  %vm61_vm5 = vcmp.eq.s32.totalorder %v50_v10, %v561_v9  ;;  %v568_v17 = vsel %vm62_vm14, 1.0, %v738_v2 }
   0xe   :  { %642 = vmatprep.subr.bf16.mxu0 %v738_v2  ;;  %vm586_vm3 = vmpackc.low %vm59_vm12, %vm58_vm11 }
   0xf   :  { %655 = vmatpush3.bf16.msk.msra.mxu1 %vm594_vm6, %v740_v11 }
  0x10   :  { %656 = vmatprep.subr.bf16.mxu1 %v738_v2 }
  0x13   :  { %657 = vmatpush3.bf16.msk.msra.mxu1 %vm596_vm15, %v740_v11 }
  0x14   :  { %18 = vsyncpa [#allocation4], 0  ;;  %658 = vmatprep.subr.bf16.mxu1 %v738_v2  ;;  %vm99_vm7 = vcmp.eq.s32.totalorder %v82_v14, %v810_v3  ;;  %643 = vmatpush3.bf16.msk.msra.mxu0 %vm586_vm3, %v740_v11  ;;  %vm100_vm8 = vcmp.eq.s32.totalorder %v83_v15, %v810_v3  ;;  %v84_v18 = vadd.s32 80, %v813_v4  ;;  %v85_v19 = vadd.s32 88, %v813_v4  ;;  %v708_v23 = vld [vmem:[%s929_s2] sm:$0xff]   ;;  %v261_v29 = vld [vmem:[%s933_s6 + $0x10] sm:$0xff] }
  0x15   :  { %vm598_vm6 = vmpackc.low %vm98_vm2, %vm97_vm1  ;;  %644 = vmatprep.subr.bf16.mxu0 %v738_v2  ;;  %v80_v20 = vpack.c.bf16 %v568_v17, %v568_v17  ;;  %vm103_vm10 = vcmp.eq.s32.totalorder %v86_v16, %v810_v3  ;;  %vm148_vm11 = vcmask 1040384   ;;  %vm144_vm1 = vcmask 408576   ;;  %v707_v26 = vld [vmem:[%s930_s3] sm:$0xff]   ;;  %v260_v31 = vld [vmem:[%s933_s6 + $0x8] sm:$0xff] }
  0x16   :  { %vm588_vm9 = vmpackc.low %vm61_vm5, %vm60_vm4  ;;  %vm101_vm13 = vcmp.eq.s32.totalorder %v84_v18, %v810_v3  ;;  %vm102_vm14 = vcmp.eq.s32.totalorder %v85_v19, %v810_v3  ;;  %v582_v21 = vsel %vm103_vm10, 1.0, %v738_v2  ;;  %vm205_vm2 = vcmask 1041408   ;;  %v709_v27 = vld [vmem:[%s932_s5] sm:$0xff]   ;;  %v262_v32 = vld [vmem:[%s933_s6 + $0x18] sm:$0xff] }
  0x17   :  { %659 = vmatpush3.bf16.msk.msra.mxu1 %vm598_vm6, %v740_v11  ;;  %vm600_vm12 = vmpackc.low %vm100_vm8, %vm99_vm7  ;;  %v150_v22 = vsel %vm148_vm11, %v80_v20, 0  ;;  %v136_v24 = vpack.c.bf16 %v582_v21, %v582_v21  ;;  %vm201_vm3 = vcmask 818176   ;;  %vm273_vm4 = vcmask 130048   ;;  %v259_v28 = vld [vmem:[%s933_s6] sm:$0xff]  ;;  %v425_v34 = vld [vmem:[%s935_s8 + $0x8] sm:$0xff] }
  0x18   :  { %660 = vmatprep.subr.bf16.mxu1 %v738_v2  ;;  %645 = vmatpush3.bf16.msk.msra.mxu0 %vm588_vm9, %v740_v11  ;;  %vm602_vm15 = vmpackc.low %vm102_vm14, %vm101_vm13  ;;  %v741_v30 = vmov 0   ;;  %v424_v33 = vld [vmem:[%s935_s8] sm:$0xff]  ;;  %v710_v46 = vld [vmem:[%s932_s5 + $0x8] sm:$0xff]   ;;  %v500_v17 = vsub.s32 0, %v813_v4  ;;  %vm545_vm5 = vcmask 57344  }
  0x19   :  { %646 = vmatprep.subr.bf16.mxu0 %v738_v2  ;;  %v207_v25 = vsel %vm205_vm2, %v136_v24, 0  ;;  %705 = vset.pattern.permute.xlu0 %v741_v30  ;;  %v491_v35 = vld [vmem:[#allocation2] sm:$0x1]  ;;  %v712_v48 = vld [vmem:[%s931_s4 + $0x8] sm:$0xff]  }
  0x1a   :  { %706 = vset.pattern.permute.xlu1 %v741_v30  ;;  %396 = vperm.xlu0 %705, %v259_v28   ;;  %v711_v47 = vld [vmem:[%s931_s4] sm:$0xff]  }
  0x1b   :  { %661 = vmatpush3.bf16.msk.msra.mxu1 %vm600_vm12, %v740_v11  ;;  %406 = vperm.xlu1 %706, %v261_v29   ;;  %v713_v5 = vld [vmem:[%s934_s7] sm:$0xff]   ;;  %s742_s7 = smov [#allocation3]  }
  0x1c   :  { %662 = vmatprep.subr.bf16.mxu1 %v738_v2  ;;  %647 = vmatpush3.bf16.msra.mxu0 %v150_v22  ;;  %s553_s0 = sshll.u32 %s742_s7, 4  ;;  %s554_s0 = int_to_ptr.vmem [resolvable:$true] %s553_s0 }
  0x1d   :  { %s714_s21 = scalar_lea.vmem %s554_s0, 16  ;;  %s718_s22 = scalar_lea.vmem %s554_s0, 32 }
  0x1e   :  { %401 = vperm.xlu0 %705, %v260_v31   ;;  %p715_p0 = scmp.ne.s32.totalorder %s554_s0, %s714_s21  ;;  %p719_p1 = scmp.lt.s32.totalorder %s554_s0, %s554_s0 }
  0x1f   :  { %663 = vmatpush3.bf16.msk.msra.mxu1 %vm602_vm15, %v740_v11  ;;  %649 = vmatmul.mubr.msk.bf16.vlgmr.msra.gmra.mrb[0].mxu0 %vm144_vm1, %v708_v23  ;;  %p720_p2 = scmp.lt.s32.totalorder %s718_s22, %s714_s21 }
  0x20   :  { %664 = vmatprep.subr.bf16.mxu1 %v738_v2  ;;  %672 = vmatprep.mubr.msk.bf16.mxu0 %vm273_vm4, %v709_v27 }
  0x21   :  { %411 = vperm.xlu1 %706, %v262_v32   ;;  %p721_p3 = por %p720_p2, %p719_p1 }
  0x22   :  { %430 = vperm.xlu0 %705, %v424_v33  }
  0x23   :  { %665 = vmatpush3.bf16.msra.mxu1 %v207_v25  ;;  %p722_p4 = pnand %p721_p3, %p715_p0 }
  0x24   :  { %682 = vmatprep.subr.bf16.mxu1 %v738_v2 }
  0x25   :  { %435 = vperm.xlu1 %706, %v425_v34  }
  0x26   :  { %667 = vmatmul.mubr.msk.bf16.vlgmr.msra.gmra.mrb[0].mxu1 %vm201_vm3, %v707_v26  ;;  %495 = vperm.xlu0 %705, %v491_v35  }
  0x27   :  { %686 = vmatprep.mubr.msk.bf16.mxu1 %vm739_vm0, %v738_v2 }
  0x99   :  { %v397_v50 = vpop.permute.xlu0 %396 }
  0x9a   :  { %v407_v49 = vpop.permute.xlu1 %406 }
  0x9d   :  { %v402_v57 = vpop.permute.xlu0 %401 }
  0xa0   :  { %v412_v54 = vpop.permute.xlu1 %411 }
  0xa1   :  { %v431_v6 = vpop.permute.xlu0 %430 }
  0xa4   :  { %v436_v10 = vpop.permute.xlu1 %435 }
  0xa5   :  { %v496_v18 = vpop.permute.xlu0 %495 }
  0xa6   :  { %v501_v19 = vrot.slane %v496_v18, %v500_v17 }
  0xf2   :  { %v186_v36 = vpop.f32.mrb[0].mxu0 }
  0xf3   :  { %v650_v37 = vpop.f32.mrb[1].mxu0 }
  0xf4   :  { %v189_v38 = vpop.f32.mrb[2].mxu0 }
  0xf5   :  { %v193_v39 = vpack.c.bf16 %v189_v38, %v186_v36  ;;  %v651_v40 = vpop.f32.mrb[3].mxu0 }
  0xf9   :  { %v243_v41 = vpop.f32.mrb[0].mxu1 }
  0xfa   :  { %v668_v42 = vpop.f32.mrb[1].mxu1 }
  0xfb   :  { %v246_v43 = vpop.f32.mrb[2].mxu1 }
  0xfc   :  { %v250_v44 = vpack.c.bf16 %v246_v43, %v243_v41  ;;  %v669_v45 = vpop.f32.mrb[3].mxu1 }
  0xfe   :  { %670 = vmatprep.subr.bf16.mxu0 %v250_v44 }
  0xff   :  { %671 = vmatpush3.bf16.msra.mxu0 %v250_v44 }
 0x100   :  { %676 = vmatprep.subr.bf16.mxu0 %v193_v39 }
 0x102   :  { %673 = vmatmul.mubr.msk.bf16.vlgmr.msra.gmra.mrb[4].mxu0 %vm273_vm4, %v710_v46 }
 0x103   :  { %677 = vmatpush3.bf16.msra.mxu0 %v193_v39  ;;  %678 = vmatprep.mubr.msk.bf16.mxu0 %vm273_vm4, %v711_v47 }
 0x104   :  { %690 = vmatprep.subr.bf16.mxu0 %v738_v2 }
 0x10e   :  { %679 = vmatmul.mubr.msk.bf16.vlgmr.msra.gmra.mrb[4].mxu0 %vm273_vm4, %v712_v48 }
 0x10f   :  { %692 = vmatprep.mubr.msk.bf16.mxu0 %vm739_vm0, %v738_v2  ;;  %vm443_vm0 = vcmask 261120  }
 0x1e1   :  { %v680_v51 = vpop.f32.mrb[4].mxu0 }
 0x1e2   :  { %v416_v52 = vadd.f32 %v680_v51, %v407_v49  ;;  %v379_v53 = vpop.f32.mrb[5].mxu0 }
 0x1e3   :  { %v414_v55 = vadd.f32 %v397_v50, %v379_v53  ;;  %v681_v56 = vpop.f32.mrb[6].mxu0 }
 0x1e4   :  { %v417_v58 = vadd.f32 %v681_v56, %v412_v54  ;;  %v382_v59 = vpop.f32.mrb[7].mxu0  ;;  %v420_v61 = vmax.f32 %v416_v52, 0.0 }
 0x1e5   :  { %v415_v60 = vadd.f32 %v402_v57, %v382_v59  ;;  %v418_v63 = vmax.f32 %v414_v55, 0.0 }
 0x1e6   :  { %v421_v62 = vmax.f32 %v417_v58, 0.0 }
 0x1e7   :  { %v419_v0 = vmax.f32 %v415_v60, 0.0 }
 0x1e8   :  { %v427_v1 = vpack.c.bf16 %v421_v62, %v420_v61 }
 0x1e9   :  { %v426_v3 = vpack.c.bf16 %v419_v0, %v418_v63 }
 0x1eb   :  { %683 = vmatpush3.bf16.msra.mxu1 %v426_v3 }
 0x1ec   :  { %684 = vmatprep.subr.bf16.mxu1 %v738_v2  ;;  %v490_v2 = vld [vmem:[%s936_s9] sm:$0x1] }
 0x1ef   :  { %685 = vmatpush3.bf16.msra.mxu1 %v427_v1 }
 0x1f2   :  { %687 = vmatmul.mubr.msk.bf16.vlgmr.msra.gmra.mrb[4].mxu1 %vm443_vm0, %v713_v5 }
 0x2c5   :  { %v481_v7 = vpop.f32.mrb[4].mxu1 }
 0x2c6   :  { %v482_v8 = vadd.f32 %v481_v7, %v431_v6  ;;  %v688_v9 = vpop.f32.mrb[5].mxu1 }
 0x2c7   :  { %v484_v11 = vpop.f32.mrb[6].mxu1 }
 0x2c8   :  { %v485_v12 = vadd.f32 %v484_v11, %v436_v10  ;;  %v689_v13 = vpop.f32.mrb[7].mxu1  ;;  %v488_v14 = vmax.f32 %v482_v8, 0.0 }
 0x2ca   :  { %v489_v15 = vmax.f32 %v485_v12, 0.0 }
 0x2cc   :  { %v492_v16 = vpack.c.bf16 %v489_v15, %v488_v14 }
 0x2ce   :  { %691 = vmatpush3.bf16.msra.mxu0 %v492_v16 }
 0x2d1   :  { %693 = vmatmul.mubr.msk.bf16.vlgmr.msra.gmra.mrb[8].mxu0 %vm273_vm4, %v490_v2 }
 0x3a4   :  { %v539_v20 = vpop.f32.mrb[8].mxu0 }
 0x3a5   :  { %v540_v21 = vadd.f32 %v539_v20, %v501_v19  ;;  %v694_v22 = vpop.f32.mrb[9].mxu0 }
 0x3a6   :  { %v542_v23 = vpop.f32.mrb[10].mxu0 }
 0x3a7   :  { %v695_v24 = vpop.f32.mrb[11].mxu0  ;;  %546 = vst.msk [vmem:[#allocation3] sm:$0x1] %vm545_vm5, %v540_v21 }
 0x3a8   :  { %725 = shalt.err (!%p722_p4)
}
 0x3a9   :  { %s726_s2 = scalar_lea.hbm %s938_s11, 16 }
 0x3aa   :  { %p727_p5 = scmp.ne.s32.totalorder %s938_s11, %s726_s2  ;;  %p730_p6 = scmp.lt.u32.totalorder %s726_s2, %s938_s11 }
 0x3ac   :  { %p732_p7 = pnand %p730_p6, %p727_p5 }
 0x3ae   :  { %735 = shalt.err (!%p732_p7)
}
 0x3af   :  { %556 = dma.vmem_to_hbm [thread:$0]  %s554_s0, 16, %s938_s11, [#allocation4]  }
 0x3b0   :  { %736 = dma.done.wait [#allocation4], 16  }
 0x3b1   :  { %737 = vsyncadd [#allocation4], 4294967280 }
 0x3b2   :  { %560 = vsyncpa [#allocation4], 1 }

</bundles_post_ra>
